<compile_context>
chip_gen: v5e
topology: v5e:2x2
jax: 0.10.0
libtpu: 0.0.40
codegen_flags: <defaults>
</compile_context>

<pallas_src>
import functools

import jax
import jax.numpy as jnp
from jax import lax
from jax.experimental import pallas as pl
from jax.experimental.pallas import tpu as pltpu


def _fcn_head_kernel(x_ref, w3t_ref, shift_ref, wct_ref, bc_ref, o_ref, *, W):
    # x_ref:     (Cin, H*W)      bf16, one NCHW image flattened over space
    # w3t_ref:   (Cout, 9*Cin)   bf16, BN-scale-folded 3x3 conv weight,
    #                            K index = tap*Cin + c
    # shift_ref: (Cout, 1)       f32, folded BN shift  beta - mean*scale
    # wct_ref:   (NC, Cout)      bf16, 1x1 classifier weight (transposed)
    # bc_ref:    (NC, 1)         f32, classifier bias
    # o_ref:     (NC, H*W)       f32 logits, already NCHW-ordered
    Cin, HW = x_ref.shape
    x = x_ref[...]                                          # (Cin, H*W)

    # Column index of each output pixel (hoisted out of the tap loop; JAX does
    # not CSE broadcasts).
    col = lax.broadcasted_iota(jnp.int32, (Cin, HW), 1) % W
    not_first_col = col > 0        # source column valid when dx == -1
    not_last_col = col < (W - 1)   # source column valid when dx == +1

    def shift_flat(arr, off):
        # y[:, p] = arr[:, p + off] for 0 <= p + off < HW, else 0.
        if off == 0:
            return arr
        fill = jnp.zeros((arr.shape[0], abs(off)), arr.dtype)
        if off > 0:
            return jnp.concatenate([arr[:, off:], fill], axis=1)
        return jnp.concatenate([fill, arr[:, :off]], axis=1)

    # im2col: 9 shifted / border-masked copies stacked on the contraction axis.
    # Flat shift by dy*W + dx handles the row halo (zero fill at the flat
    # ends); the column masks handle the dx wrap across row boundaries,
    # reproducing the conv's zero padding exactly.
    taps = []
    for dy in (-1, 0, 1):
        for dx in (-1, 0, 1):
            p = shift_flat(x, dy * W + dx)
            if dx == -1:
                p = jnp.where(not_first_col, p, 0.0).astype(x.dtype)
            elif dx == 1:
                p = jnp.where(not_last_col, p, 0.0).astype(x.dtype)
            taps.append(p)
    patches = jnp.concatenate(taps, axis=0)                 # (9*Cin, H*W) bf16

    # Conv3x3 (with BN scale folded into the weight) as one MXU matmul,
    # K = 9*Cin, f32 accumulation.
    acc = jnp.dot(w3t_ref[...], patches,
                  preferred_element_type=jnp.float32)       # (Cout, H*W) f32

    # BatchNorm shift (scale already folded) + ReLU, channel-major.
    feat = jnp.maximum(acc + shift_ref[...], 0.0)

    # Dropout2d(p=0.1) is the identity in eval/inference mode.
    # 1x1 classifier: (NC, Cout) @ (Cout, H*W) + bias; lane-dense output store.
    logits = jnp.dot(wct_ref[...], feat.astype(wct_ref.dtype),
                     preferred_element_type=jnp.float32) + bc_ref[...]
    o_ref[...] = logits.astype(o_ref.dtype)


def fcn_head_forward(x_nchw, w3, gamma, beta, mean, var, wc, bc, *, eps=1e-5):
    """FCNHead forward. x_nchw: (N, Cin, H, W). Returns (N, num_classes, H, W)."""
    N, Cin, H, W = x_nchw.shape
    Cout = w3.shape[3]
    NC = wc.shape[1]
    HW = H * W

    # No transpose, no pad: NCHW -> (N, Cin, H*W) is a pure reshape.
    x = x_nchw.reshape(N, Cin, HW).astype(jnp.bfloat16)

    # Fold the eval-mode BatchNorm into the conv:
    #   scale = gamma / sqrt(var + eps)   (multiplies each output channel)
    #   shift = beta - mean * scale       (added after the conv)
    inv_std = 1.0 / jnp.sqrt(var.astype(jnp.float32) + eps)
    scale = gamma.astype(jnp.float32) * inv_std                       # (Cout,)
    shift = (beta.astype(jnp.float32)
             - mean.astype(jnp.float32) * scale).reshape(Cout, 1)

    # (3,3,Cin,Cout) HWIO * scale -> (9*Cin, Cout) with K index = (ky*3+kx)*Cin + c,
    # then transpose so the kernel does (Cout, K) @ (K, H*W). Fold in f32,
    # cast to bf16 once.
    w3f = (w3.astype(jnp.float32) * scale).reshape(9 * Cin, Cout)
    w3t = jnp.transpose(w3f).astype(jnp.bfloat16)                     # (Cout, 9*Cin)
    wct = jnp.transpose(wc).astype(jnp.bfloat16)                      # (NC, Cout)
    bcr = bc.reshape(NC, 1).astype(jnp.float32)

    kernel = functools.partial(_fcn_head_kernel, W=W)

    out = pl.pallas_call(
        kernel,
        out_shape=jax.ShapeDtypeStruct((N, NC, HW), jnp.float32),
        grid_spec=pltpu.PrefetchScalarGridSpec(
            num_scalar_prefetch=0,
            grid=(N,),
            in_specs=[
                pl.BlockSpec((pl.Squeezed(), Cin, HW), lambda n: (n, 0, 0)),
                pl.BlockSpec((Cout, 9 * Cin), lambda n: (0, 0)),
                pl.BlockSpec((Cout, 1), lambda n: (0, 0)),
                pl.BlockSpec((NC, Cout), lambda n: (0, 0)),
                pl.BlockSpec((NC, 1), lambda n: (0, 0)),
            ],
            out_specs=pl.BlockSpec((pl.Squeezed(), NC, HW), lambda n: (n, 0, 0)),
        ),
        compiler_params=pltpu.CompilerParams(dimension_semantics=("parallel",)),
    )(x, w3t, shift, wct, bcr)

    # Output is already channel-major (NCHW); just un-flatten space.
    return out.reshape(N, NC, H, W)


def fcn_head_reference(x_nchw, w3, gamma, beta, mean, var, wc, bc, *, eps=1e-5):
    """Pure-JAX f32 reference (same math as the PyTorch module in eval mode)."""
    x = jnp.transpose(x_nchw, (0, 2, 3, 1)).astype(jnp.float32)
    y = lax.conv_general_dilated(
        x, w3.astype(jnp.float32), window_strides=(1, 1),
        padding=((1, 1), (1, 1)),
        dimension_numbers=('NHWC', 'HWIO', 'NHWC'))
    inv_std = 1.0 / jnp.sqrt(var.astype(jnp.float32) + eps)
    y = y * (gamma * inv_std) + (beta - mean * gamma * inv_std)
    y = jnp.maximum(y, 0.0)
    logits = jnp.einsum('nhwc,ck->nhwk', y, wc.astype(jnp.float32)) + bc
    return jnp.transpose(logits, (0, 3, 1, 2))


if __name__ == "__main__":
    key = jax.random.PRNGKey(0)
    ks = jax.random.split(key, 8)

    # Small, module-consistent shapes: NCHW input, in_channels=4, channels=32,
    # num_classes=14 (module default), 16x16 spatial.
    N, Cin, H, W = 2, 4, 16, 16
    Cout, NC = 32, 14

    x = jax.random.normal(ks[0], (N, Cin, H, W), jnp.float32)
    # Conv2d(in, channels, 3, padding=1, bias=False) weight (HWIO layout here).
    w3 = jax.random.normal(ks[1], (3, 3, Cin, Cout), jnp.float32) * 0.1
    # BatchNorm2d(channels) parameters / running stats (eval-mode semantics).
    gamma = jax.random.uniform(ks[2], (Cout,), jnp.float32, 0.8, 1.2)
    beta = jax.random.normal(ks[3], (Cout,), jnp.float32) * 0.1
    mean = jax.random.normal(ks[4], (Cout,), jnp.float32) * 0.1
    var = jax.random.uniform(ks[5], (Cout,), jnp.float32, 0.5, 1.5)
    # cls_seg Conv2d(channels, num_classes, 1x1) weight + bias.
    wc = jax.random.normal(ks[6], (Cout, NC), jnp.float32) * 0.1
    bc = jax.random.normal(ks[7], (NC,), jnp.float32) * 0.1

    out = fcn_head_forward(x, w3, gamma, beta, mean, var, wc, bc)
    out = jax.block_until_ready(out)

    ref = fcn_head_reference(x, w3, gamma, beta, mean, var, wc, bc)
    assert out.shape == (N, NC, H, W)
    err = float(jnp.max(jnp.abs(out - ref)))
    # bf16 inputs/weights (f32 accumulation) vs f32 reference -> relaxed tolerance.
    assert jnp.allclose(out, ref, atol=1e-1, rtol=1e-1), f"max abs err {err}"
    print("KERNEL_OK")
</pallas_src>

<mosaic_0001>
module attributes {stable_mosaic.version = 11 : i64} {
  func.func @_fcn_head_kernel(%arg0: i32, %arg1: memref<1x4x256xbf16, #tpu.memory_space<vmem>>, %arg2: memref<32x36xbf16, #tpu.memory_space<vmem>>, %arg3: memref<32x1xf32, #tpu.memory_space<vmem>>, %arg4: memref<14x32xbf16, #tpu.memory_space<vmem>>, %arg5: memref<14x1xf32, #tpu.memory_space<vmem>>, %arg6: memref<1x14x256xf32, #tpu.memory_space<vmem>>) attributes {dimension_semantics = [#tpu.dimension_semantics<parallel>], iteration_bounds = array<i64: 2>, scalar_prefetch = 0 : i64, scratch_operands = 0 : i64, tpu.core_type = #tpu.core_type<tc>, window_params = [{transform_indices = @transform_0, window_bounds = array<i64: 1, 4, 256>}, {pipeline_mode = #tpu.pipeline_mode<synchronous>, transform_indices = @transform_1, window_bounds = array<i64: 32, 36>}, {pipeline_mode = #tpu.pipeline_mode<synchronous>, transform_indices = @transform_2, window_bounds = array<i64: 32, 1>}, {pipeline_mode = #tpu.pipeline_mode<synchronous>, transform_indices = @transform_3, window_bounds = array<i64: 14, 32>}, {pipeline_mode = #tpu.pipeline_mode<synchronous>, transform_indices = @transform_4, window_bounds = array<i64: 14, 1>}, {transform_indices = @transform_5, window_bounds = array<i64: 1, 14, 256>}]} {
    %c0 = arith.constant 0 : index
    %c0_0 = arith.constant 0 : index
    %c0_1 = arith.constant 0 : index
    %0 = vector.load %arg1[%c0, %c0_0, %c0_1] : memref<1x4x256xbf16, #tpu.memory_space<vmem>>, vector<1x4x256xbf16>
    %1 = vector.shape_cast %0 : vector<1x4x256xbf16> to vector<4x256xbf16>
    %2 = tpu.iota {dimensions = array<i32: 1>} : vector<4x256xi32>
    %c16_i32 = arith.constant 16 : i32
    %c0_i32 = arith.constant 0 : i32
    %3 = arith.cmpi eq, %c16_i32, %c0_i32 : i32
    %c1_i32 = arith.constant 1 : i32
    %4 = arith.select %3, %c1_i32, %c16_i32 : i32
    %5 = vector.broadcast %4 : i32 to vector<4x256xi32>
    %6 = arith.remsi %2, %5 : vector<4x256xi32>
    %c0_i32_2 = arith.constant 0 : i32
    %7 = vector.broadcast %c0_i32_2 : i32 to vector<4x256xi32>
    %8 = arith.cmpi ne, %6, %7 : vector<4x256xi32>
    %c0_i32_3 = arith.constant 0 : i32
    %9 = vector.broadcast %c0_i32_3 : i32 to vector<4x256xi32>
    %10 = arith.cmpi slt, %6, %9 : vector<4x256xi32>
    %c0_i32_4 = arith.constant 0 : i32
    %11 = arith.cmpi slt, %4, %c0_i32_4 : i32
    %12 = vector.broadcast %11 : i1 to vector<4x256xi1>
    %13 = vector.broadcast %12 : vector<4x256xi1> to vector<4x256xi1>
    %14 = arith.xori %10, %13 : vector<4x256xi1>
    %15 = arith.andi %14, %8 : vector<4x256xi1>
    %16 = vector.broadcast %4 : i32 to vector<4x256xi32>
    %17 = arith.addi %6, %16 : vector<4x256xi32>
    %18 = arith.select %15, %17, %6 : vector<4x256xi1>, vector<4x256xi32>
    %c0_i32_5 = arith.constant 0 : i32
    %19 = vector.broadcast %c0_i32_5 : i32 to vector<4x256xi32>
    %20 = arith.cmpi sgt, %18, %19 : vector<4x256xi32>
    %c15_i32 = arith.constant 15 : i32
    %21 = vector.broadcast %c15_i32 : i32 to vector<4x256xi32>
    %22 = arith.cmpi slt, %18, %21 : vector<4x256xi32>
    %cst = arith.constant 0.000000e+00 : bf16
    %23 = vector.broadcast %cst : bf16 to vector<4x17xbf16>
    %24 = vector.extract_strided_slice %1 {offsets = [0, 0], sizes = [4, 239], strides = [1, 1]} : vector<4x256xbf16> to vector<4x239xbf16>
    %25 = tpu.concatenate %23, %24 in 1 : vector<4x17xbf16>, vector<4x239xbf16> -> vector<4x256xbf16>
    %cst_6 = arith.constant 0.000000e+00 : f32
    %26 = arith.truncf %cst_6 : f32 to bf16
    %27 = vector.broadcast %26 : bf16 to vector<4x256xbf16>
    %28 = arith.select %20, %25, %27 : vector<4x256xi1>, vector<4x256xbf16>
    %cst_7 = arith.constant 0.000000e+00 : bf16
    %29 = vector.broadcast %cst_7 : bf16 to vector<4x16xbf16>
    %30 = vector.extract_strided_slice %1 {offsets = [0, 0], sizes = [4, 240], strides = [1, 1]} : vector<4x256xbf16> to vector<4x240xbf16>
    %31 = tpu.concatenate %29, %30 in 1 : vector<4x16xbf16>, vector<4x240xbf16> -> vector<4x256xbf16>
    %cst_8 = arith.constant 0.000000e+00 : bf16
    %32 = vector.broadcast %cst_8 : bf16 to vector<4x15xbf16>
    %33 = vector.extract_strided_slice %1 {offsets = [0, 0], sizes = [4, 241], strides = [1, 1]} : vector<4x256xbf16> to vector<4x241xbf16>
    %34 = tpu.concatenate %32, %33 in 1 : vector<4x15xbf16>, vector<4x241xbf16> -> vector<4x256xbf16>
    %cst_9 = arith.constant 0.000000e+00 : f32
    %35 = arith.truncf %cst_9 : f32 to bf16
    %36 = vector.broadcast %35 : bf16 to vector<4x256xbf16>
    %37 = arith.select %22, %34, %36 : vector<4x256xi1>, vector<4x256xbf16>
    %cst_10 = arith.constant 0.000000e+00 : bf16
    %38 = vector.broadcast %cst_10 : bf16 to vector<4x1xbf16>
    %39 = vector.extract_strided_slice %1 {offsets = [0, 0], sizes = [4, 255], strides = [1, 1]} : vector<4x256xbf16> to vector<4x255xbf16>
    %40 = tpu.concatenate %38, %39 in 1 : vector<4x1xbf16>, vector<4x255xbf16> -> vector<4x256xbf16>
    %cst_11 = arith.constant 0.000000e+00 : f32
    %41 = arith.truncf %cst_11 : f32 to bf16
    %42 = vector.broadcast %41 : bf16 to vector<4x256xbf16>
    %43 = arith.select %20, %40, %42 : vector<4x256xi1>, vector<4x256xbf16>
    %cst_12 = arith.constant 0.000000e+00 : bf16
    %44 = vector.broadcast %cst_12 : bf16 to vector<4x1xbf16>
    %45 = vector.extract_strided_slice %1 {offsets = [0, 1], sizes = [4, 255], strides = [1, 1]} : vector<4x256xbf16> to vector<4x255xbf16>
    %46 = tpu.concatenate %45, %44 in 1 : vector<4x255xbf16>, vector<4x1xbf16> -> vector<4x256xbf16>
    %cst_13 = arith.constant 0.000000e+00 : f32
    %47 = arith.truncf %cst_13 : f32 to bf16
    %48 = vector.broadcast %47 : bf16 to vector<4x256xbf16>
    %49 = arith.select %22, %46, %48 : vector<4x256xi1>, vector<4x256xbf16>
    %cst_14 = arith.constant 0.000000e+00 : bf16
    %50 = vector.broadcast %cst_14 : bf16 to vector<4x15xbf16>
    %51 = vector.extract_strided_slice %1 {offsets = [0, 15], sizes = [4, 241], strides = [1, 1]} : vector<4x256xbf16> to vector<4x241xbf16>
    %52 = tpu.concatenate %51, %50 in 1 : vector<4x241xbf16>, vector<4x15xbf16> -> vector<4x256xbf16>
    %cst_15 = arith.constant 0.000000e+00 : f32
    %53 = arith.truncf %cst_15 : f32 to bf16
    %54 = vector.broadcast %53 : bf16 to vector<4x256xbf16>
    %55 = arith.select %20, %52, %54 : vector<4x256xi1>, vector<4x256xbf16>
    %cst_16 = arith.constant 0.000000e+00 : bf16
    %56 = vector.broadcast %cst_16 : bf16 to vector<4x16xbf16>
    %57 = vector.extract_strided_slice %1 {offsets = [0, 16], sizes = [4, 240], strides = [1, 1]} : vector<4x256xbf16> to vector<4x240xbf16>
    %58 = tpu.concatenate %57, %56 in 1 : vector<4x240xbf16>, vector<4x16xbf16> -> vector<4x256xbf16>
    %cst_17 = arith.constant 0.000000e+00 : bf16
    %59 = vector.broadcast %cst_17 : bf16 to vector<4x17xbf16>
    %60 = vector.extract_strided_slice %1 {offsets = [0, 17], sizes = [4, 239], strides = [1, 1]} : vector<4x256xbf16> to vector<4x239xbf16>
    %61 = tpu.concatenate %60, %59 in 1 : vector<4x239xbf16>, vector<4x17xbf16> -> vector<4x256xbf16>
    %cst_18 = arith.constant 0.000000e+00 : f32
    %62 = arith.truncf %cst_18 : f32 to bf16
    %63 = vector.broadcast %62 : bf16 to vector<4x256xbf16>
    %64 = arith.select %22, %61, %63 : vector<4x256xi1>, vector<4x256xbf16>
    %65 = tpu.concatenate %28, %31, %37, %43, %1, %49, %55, %58, %64 in 0 : vector<4x256xbf16>, vector<4x256xbf16>, vector<4x256xbf16>, vector<4x256xbf16>, vector<4x256xbf16>, vector<4x256xbf16>, vector<4x256xbf16>, vector<4x256xbf16>, vector<4x256xbf16> -> vector<36x256xbf16>
    %c0_19 = arith.constant 0 : index
    %c0_20 = arith.constant 0 : index
    %66 = vector.load %arg2[%c0_19, %c0_20] : memref<32x36xbf16, #tpu.memory_space<vmem>>, vector<32x36xbf16>
    %cst_21 = arith.constant dense<0.000000e+00> : vector<32x256xf32>
    %67 = tpu.matmul %66, %65, %cst_21 {dimension_numbers = #tpu.dot_dimension_numbers<[1], [0], [0], [1], [0, 0, 1, 1], [], []>} : vector<32x36xbf16>, vector<36x256xbf16>, vector<32x256xf32> -> vector<32x256xf32>
    %c0_22 = arith.constant 0 : index
    %c0_23 = arith.constant 0 : index
    %68 = vector.load %arg3[%c0_22, %c0_23] : memref<32x1xf32, #tpu.memory_space<vmem>>, vector<32x1xf32>
    %69 = vector.broadcast %68 : vector<32x1xf32> to vector<32x256xf32>
    %70 = arith.addf %67, %69 : vector<32x256xf32>
    %cst_24 = arith.constant 0.000000e+00 : f32
    %71 = vector.broadcast %cst_24 : f32 to vector<32x256xf32>
    %72 = arith.maximumf %70, %71 : vector<32x256xf32>
    %c0_25 = arith.constant 0 : index
    %c0_26 = arith.constant 0 : index
    %73 = vector.load %arg4[%c0_25, %c0_26] : memref<14x32xbf16, #tpu.memory_space<vmem>>, vector<14x32xbf16>
    %74 = arith.truncf %72 : vector<32x256xf32> to vector<32x256xbf16>
    %cst_27 = arith.constant dense<0.000000e+00> : vector<14x256xf32>
    %75 = tpu.matmul %73, %74, %cst_27 {dimension_numbers = #tpu.dot_dimension_numbers<[1], [0], [0], [1], [0, 0, 1, 1], [], []>} : vector<14x32xbf16>, vector<32x256xbf16>, vector<14x256xf32> -> vector<14x256xf32>
    %c0_28 = arith.constant 0 : index
    %c0_29 = arith.constant 0 : index
    %76 = vector.load %arg5[%c0_28, %c0_29] : memref<14x1xf32, #tpu.memory_space<vmem>>, vector<14x1xf32>
    %77 = vector.broadcast %76 : vector<14x1xf32> to vector<14x256xf32>
    %78 = arith.addf %75, %77 : vector<14x256xf32>
    %c0_30 = arith.constant 0 : index
    %c0_31 = arith.constant 0 : index
    %c0_32 = arith.constant 0 : index
    %79 = vector.load %arg6[%c0_30, %c0_31, %c0_32] : memref<1x14x256xf32, #tpu.memory_space<vmem>>, vector<1x14x256xf32>
    %80 = vector.shape_cast %79 : vector<1x14x256xf32> to vector<14x256xf32>
    %81 = vector.shape_cast %78 : vector<14x256xf32> to vector<1x14x256xf32>
    tpu.vector_store %arg6[%c0_30, %c0_31, %c0_32], %81 {strides = array<i32>} : memref<1x14x256xf32, #tpu.memory_space<vmem>>, vector<1x14x256xf32>,
    return
  }
  func.func @transform_0(%arg0: i32) -> (i32, i32, i32) {
    %c0_i32 = arith.constant 0 : i32
    %c0_i32_0 = arith.constant 0 : i32
    %c0_i32_1 = arith.constant 0 : i32
    return %arg0, %c0_i32, %c0_i32_0 : i32, i32, i32
  }
  func.func @transform_1(%arg0: i32) -> (i32, i32) {
    %c0_i32 = arith.constant 0 : i32
    %c0_i32_0 = arith.constant 0 : i32
    %c0_i32_1 = arith.constant 0 : i32
    return %c0_i32, %c0_i32_0 : i32, i32
  }
  func.func @transform_2(%arg0: i32) -> (i32, i32) {
    %c0_i32 = arith.constant 0 : i32
    %c0_i32_0 = arith.constant 0 : i32
    %c0_i32_1 = arith.constant 0 : i32
    return %c0_i32, %c0_i32_0 : i32, i32
  }
  func.func @transform_3(%arg0: i32) -> (i32, i32) {
    %c0_i32 = arith.constant 0 : i32
    %c0_i32_0 = arith.constant 0 : i32
    %c0_i32_1 = arith.constant 0 : i32
    return %c0_i32, %c0_i32_0 : i32, i32
  }
  func.func @transform_4(%arg0: i32) -> (i32, i32) {
    %c0_i32 = arith.constant 0 : i32
    %c0_i32_0 = arith.constant 0 : i32
    %c0_i32_1 = arith.constant 0 : i32
    return %c0_i32, %c0_i32_0 : i32, i32
  }
  func.func @transform_5(%arg0: i32) -> (i32, i32, i32) {
    %c0_i32 = arith.constant 0 : i32
    %c0_i32_0 = arith.constant 0 : i32
    %c0_i32_1 = arith.constant 0 : i32
    return %arg0, %c0_i32, %c0_i32_0 : i32, i32, i32
  }
}

</mosaic_0001>

<bundles_post_ra>
// kernel: tpu_custom_call.1
= control target key start
LH: loop header
LB: loop body
LE: loop exit
PB: predicated region body
PF: predicated region fallthrough
CT: control target
= control target key end

     0   :  { %s804_s18 = smov 0   ;;  %s945_s0 = inlined_call_operand.vmem [shape: bf16[2,4,256], index: 0, kind: input, shape index: {}]   ;;  %s946_s1 = inlined_call_operand.vmem [shape: bf16[32,36], index: 1, kind: input, shape index: {}]   ;;  %s947_s2 = inlined_call_operand.vmem [shape: f32[32,1], index: 2, kind: input, shape index: {}]   ;;  %s948_s3 = inlined_call_operand.vmem [shape: bf16[14,32], index: 3, kind: input, shape index: {}]   ;;  %s949_s4 = inlined_call_operand.vmem [shape: f32[14,1], index: 4, kind: input, shape index: {}]   ;;  %s950_s5 = inlined_call_operand.vmem [shape: f32[2,14,256], index: 5, kind: output, shape index: {}]  }
   0x1 LB: > { %s703_s19 = sadd.s32 4294967295, %s763_s18   ;;  %p707_p0 = scmp.ge.s32.totalorder %s763_s18, 1  ;;  %s763_s18 = sphi %s804_s18, %s15_s18  }
   0x2   : > { %p187_p1 = scmp.lt.s32.totalorder %s763_s18, 3 }
   0x4   : > { %p188_p2 = pnand %p707_p0, %p187_p1 }
   0x5   : > { %p215_p3 = scmp.lt.s32.totalorder (!%p188_p2), %s703_s19, 1  ;;  %s765_s24 = smov (!%p188_p2), 17  }
   0x6   : > { %191 = sbr.rel (%p188_p2) target bundleno = 524 (0x20c), region = 40  ;;  %s766_s25 = smov (!%p188_p2), 16  }
   0x7   : > { %s767_s26 = smov (!%p188_p2), 15   ;;  %s768_s27 = smov (!%p188_p2), 127  }
   0x8   : > { %s769_s28 = smov (!%p188_p2), 113   ;;  %s770_s29 = smov (!%p188_p2), 112  }
   0x9   : > { %s771_s30 = smov (!%p188_p2), 1   ;;  %s772_s6 = smov (!%p188_p2), 111  }
   0xb   : > { %s960_s19 = smov (!%p215_p3, %s703_s19), 1  ;;  %v773_v17 = vmov 0   ;;  %v229_v19 = vlaneseq  ;;  %v498_v42 = vld [vmem:[%s947_s2 + $0x10] sm:$0xff]  ;;  %v496_v43 = vld [vmem:[%s947_s2] sm:$0xff]  ;;  %vm375_vm6 = vcmask 1039360   ;;  %vm393_vm9 = vcmask 924672  }
   0xc   : > { %s732_s20 = sshll.u32 %s960_s19, 2  ;;  %754 = vset.pattern.permute.xlu1 %v773_v17  ;;  %756 = vset.pattern.permute.xlu0 %v773_v17  ;;  %v284_v38 = vunpack.c.l.b16 %v773_v17  ;;  %v285_v39 = vunpack.c.h.b16 %v773_v17  ;;  %vm307_vm14 = vcmask 130048   ;;  %vm270_vm15 = vcmask 138240   ;;  %v734_v56 = vld [vmem:[%s946_s1] sm:$0xff]  ;;  %v735_v57 = vld [vmem:[%s946_s1 + $0x8] sm:$0xff] }
   0xd   : > { %s219_s23 = scalar_lea.vmem %s945_s0, %s732_s20  ;;  %755 = vset.pattern.permute.xlu2 %v773_v17  ;;  %v230_v21 = vand.u32 127, %v229_v19 }
   0xe   : > { %v228_v0 = vld [vmem:[%s219_s23] sm:$0xf] }
   0xf   : > { %261 = vst [vmem:[#allocation1] ss:$4 sm:$0xff] %v228_v0  ;;  %v231_v23 = vadd.s32 128, %v230_v21  ;;  %v236_v25 = vand.u32 15, %v230_v21 }
  0x11   : > { %v243_v26 = vand.u32 15, %v231_v23  ;;  %vm258_vm0 = vcmp.lt.s32.totalorder %v236_v25, 15  ;;  %vm256_vm2 = vcmp.gt.s32.totalorder %v236_v25, 0 }
  0x13   : > { %vm259_vm1 = vcmp.lt.s32.totalorder %v243_v26, 15  ;;  %vm257_vm3 = vcmp.gt.s32.totalorder %v243_v26, 0 }
  0x14   : > { %vm328_vm4 = vmpackc.low %vm259_vm1, %vm258_vm0 }
  0x15   : > { %vm278_vm5 = vmpackc.low %vm257_vm3, %vm256_vm2  ;;  %v329_v30 = vsel %vm328_vm4, 65537, %v773_v17  ;;  %vm321_vm3 = vcmask 121856  }
  0x16   : > { %v262_v1 = vld.sshfl [vmem:[#allocation1] sm:$0xff pattern:$0x73625140]  ;;  %v264_v2 = vld.sshfl [vmem:[#allocation1 + $0x8] sm:$0xff pattern:$0x73625140] }
  0x17   : > { %266 = vrot.lane.b32.xlu0 %v262_v1, %s765_s24  ;;  %298 = vst [vmem:[#allocation1] ss:$4 sm:$0xff] %v228_v0  ;;  %v279_v31 = vsel %vm278_vm5, 65537, %v773_v17  ;;  %v330_v32 = vperm.slane %v329_v30, 0  ;;  %v331_v33 = vperm.slane %v329_v30, 4 }
  0x18   : > { %v281_v35 = vperm.slane %v279_v31, 4  ;;  %v280_v36 = vperm.slane %v279_v31, 0 }
  0x19   : > { %v332_v40 = vunpack.c.l.b16 %v330_v32  ;;  %v333_v41 = vunpack.c.h.b16 %v330_v32  ;;  %v339_v44 = vunpack.c.l.b16 %v331_v33  ;;  %v340_v45 = vunpack.c.h.b16 %v331_v33 }
  0x1a   : > { %v289_v46 = vunpack.c.l.b16 %v281_v35  ;;  %v290_v47 = vunpack.c.h.b16 %v281_v35  ;;  %v282_v49 = vunpack.c.l.b16 %v280_v36  ;;  %v283_v50 = vunpack.c.h.b16 %v280_v36 }
  0x1b   : > { %vm336_vm7 = vcmp.ne.s32.totalorder %v332_v40, %v284_v38  ;;  %vm337_vm8 = vcmp.ne.s32.totalorder %v333_v41, %v285_v39  ;;  %vm343_vm10 = vcmp.ne.s32.totalorder %v339_v44, %v284_v38  ;;  %vm344_vm11 = vcmp.ne.s32.totalorder %v340_v45, %v285_v39 }
  0x1c   : > { %vm293_vm12 = vcmp.ne.s32.totalorder %v289_v46, %v284_v38  ;;  %vm294_vm13 = vcmp.ne.s32.totalorder %v290_v47, %v285_v39  ;;  %vm286_vm0 = vcmp.ne.s32.totalorder %v282_v49, %v284_v38  ;;  %vm287_vm1 = vcmp.ne.s32.totalorder %v283_v50, %v285_v39  ;;  %vm838_vm2 = vmpackc.low %vm337_vm8, %vm336_vm7  ;;  %v596_v47 = vld [vmem:[%s949_s4 + $0x8] sm:$0x3f] }
  0x1d   : > { %vm842_vm4 = vmpackc.low %vm344_vm11, %vm343_vm10  ;;  %vm357_vm7 = vcmask 7168   ;;  %vm411_vm8 = vcmask 916480   ;;  %vm459_vm10 = vcmask 1041408   ;;  %vm466_vm11 = vcmask 1043456  }
  0x1e   : > { %v301_v3 = vld.sshfl [vmem:[#allocation1 + $0x8] sm:$0xff pattern:$0x73625140]  ;;  %v299_v4 = vld.sshfl [vmem:[#allocation1] sm:$0xff pattern:$0x73625140]  ;;  %vm846_vm5 = vmpackc.low %vm294_vm13, %vm293_vm12 }
  0x1f   : > { %305 = vrot.lane.b32.xlu0 %v301_v3, %s766_s25  ;;  %303 = vrot.lane.b32.xlu2 %v299_v4, %s766_s25  ;;  %312 = vst [vmem:[#allocation1] ss:$4 sm:$0xff] %v228_v0  ;;  %vm471_vm12 = vcmask 1045504   ;;  %vm530_vm13 = vcmask 293888  }
  0x26   : > { %v313_v5 = vld.sshfl [vmem:[#allocation1] sm:$0xff pattern:$0x73625140]  ;;  %v315_v6 = vld.sshfl [vmem:[#allocation1 + $0x8] sm:$0xff pattern:$0x73625140] }
  0x27   : > { %317 = vrot.lane.b32.xlu1 %v313_v5, %s767_s26  ;;  %319 = vrot.lane.b32.xlu2 %v315_v6, %s767_s26  ;;  %348 = vst [vmem:[#allocation1] ss:$4 sm:$0xff] %v228_v0 }
  0x2e   : > { %v349_v7 = vld.sshfl [vmem:[#allocation1] sm:$0xff pattern:$0x73625140]  ;;  %v351_v8 = vld.sshfl [vmem:[#allocation1 + $0x8] sm:$0xff pattern:$0x73625140] }
  0x2f   : > { %366 = vst [vmem:[#allocation1] ss:$4 sm:$0xff] %v228_v0 }
  0x36   : > { %v367_v9 = vld.sshfl [vmem:[#allocation1] sm:$0xff pattern:$0x73625140]  ;;  %v369_v10 = vld.sshfl [vmem:[#allocation1 + $0x8] sm:$0xff pattern:$0x73625140] }
  0x37   : > { %371 = vrot.lane.b32.xlu0 %v367_v9, %s768_s27  ;;  %384 = vst [vmem:[#allocation1] ss:$4 sm:$0xff] %v228_v0 }
  0x3e   : > { %v385_v11 = vld.sshfl [vmem:[#allocation1] sm:$0xff pattern:$0x73625140]  ;;  %v387_v12 = vld.sshfl [vmem:[#allocation1 + $0x8] sm:$0xff pattern:$0x73625140] }
  0x3f   : > { %373 = vrot.lane.b32.xlu0 %v369_v10, %s768_s27  ;;  %389 = vrot.lane.b32.xlu2 %v385_v11, %s769_s28  ;;  %402 = vst [vmem:[#allocation1] ss:$4 sm:$0xff] %v228_v0 }
  0x46   : > { %v405_v13 = vld.sshfl [vmem:[#allocation1 + $0x8] sm:$0xff pattern:$0x73625140]  ;;  %v403_v14 = vld.sshfl [vmem:[#allocation1] sm:$0xff pattern:$0x73625140] }
  0x47   : > { %391 = vrot.lane.b32.xlu2 %v387_v12, %s769_s28  ;;  %409 = vrot.lane.b32.xlu1 %v405_v13, %s770_s29  ;;  %416 = vst [vmem:[#allocation1] ss:$4 sm:$0xff] %v228_v0 }
  0x48   : > { %407 = vrot.lane.b32.xlu0 %v403_v14, %s770_s29  ;;  %s733_s29 = sshll.u32 %s960_s19, 5 }
  0x49   : > { %s224_s7 = scalar_lea.vmem %s950_s5, %s733_s29 }
  0x4e   : > { %v417_v15 = vld.sshfl [vmem:[#allocation1] sm:$0xff pattern:$0x73625140]  ;;  %v419_v16 = vld.sshfl [vmem:[#allocation1 + $0x8] sm:$0xff pattern:$0x73625140] }
  0x4f   : > { %353 = vrot.lane.b32.xlu2 %v349_v7, %s771_s30  ;;  %421 = vrot.lane.b32.xlu1 %v417_v15, %s772_s6  ;;  %445 = vst [vmem:[#allocation1] ss:$4 sm:$0xff] %v228_v0 }
  0x50   : > { %355 = vrot.lane.b32.xlu0 %v351_v8, %s771_s30 }
  0x56   : > { %v447_v10 = vld.sshfl [vmem:[#allocation1 + $0x8] sm:$0xff pattern:$0x73625140] }
  0x57   : > { %423 = vrot.lane.b32.xlu1 %v419_v16, %s772_s6 }
  0x58   : > { %502 = vperm.xlu0 %756, %v496_v43  }
  0x5f   : > { %268 = vrot.lane.b32.xlu1 %v264_v2, %s765_s24  ;;  %v446_v2 = vld.sshfl [vmem:[#allocation1] sm:$0xff pattern:$0x73625140] }
  0x67   : > { %512 = vperm.xlu1 %754, %v498_v42  }
  0x79   : > { %v822_v20 = vpop.permute.xlu2 %303 }
  0x7a   : > { %v311_v62 = vsel %vm307_vm14, 0, %v822_v20 }
  0x7b   : > { %v435_v8 = vrot.slane %v311_v62, 6 }
  0x81   : > { %v826_v24 = vpop.permute.xlu2 %319 }
  0x89   : > { %v820_v18 = vpop.permute.xlu0 %266 }
  0x8a   : > { %v276_v0 = vsel %vm270_vm15, 0, %v820_v18 }
  0x91   : > { %v824_v22 = vpop.permute.xlu0 %305 }
  0x92   : > { %v308_v41 = vsel %vm307_vm14, %v822_v20, %v824_v22  ;;  %v595_v20 = vld [vmem:[%s949_s4] sm:$0xff]  ;;  %vm612_vm14 = vcmask 261120  }
  0x93   : > { %v436_v49 = vrot.slane %v308_v41, 6 }
  0x99   : > { %v828_v28 = vpop.permute.xlu1 %317  ;;  %v390_v29 = vpop.permute.xlu2 %389 }
  0x9a   : > { %v326_v1 = vsel %vm321_vm3, 0, %v828_v28  ;;  %v322_v30 = vsel %vm321_vm3, %v828_v28, %v826_v24 }
  0x9b   : > { %v346_v11 = vsel %vm838_vm2, %v326_v1, 0  ;;  %v347_v43 = vsel %vm842_vm4, %v322_v30, 0  ;;  %v736_v30 = vld [vmem:[%s948_s3] sm:$0x70] }
  0x9c   : > { %v439_v38 = vrot.slane %v346_v11, 4 }
  0xa1   : > { %v392_v48 = vpop.permute.xlu2 %391 }
  0xa2   : > { %v394_v58 = vsel %vm393_vm9, %v390_v29, %v392_v48  ;;  %v398_v59 = vsel %vm393_vm9, %v392_v48, 0  ;;  %vm425_vm9 = vcmask 908288   ;;  %v499_v29 = vld [vmem:[%s947_s2 + $0x18] sm:$0xff] }
  0xa3   : > { %v401_v4 = vsel %vm846_vm5, %v398_v59, 0  ;;  %517 = vperm.xlu2 %755, %v499_v29   ;;  %v726_v29 = vld [vmem:[%s948_s3] sm:$0xf] }
  0xa4   : > { %v455_v14 = vrot.slane %v401_v4, 4 }
  0xa9   : > { %v372_v27 = vpop.permute.xlu0 %371  ;;  %v354_v5 = vpop.permute.xlu2 %353 }
  0xaa   : > { %v362_v15 = vsel %vm357_vm7, 0, %v354_v5 }
  0xab   : > { %599 = vperm.xlu2 %755, %v595_v20  }
  0xb1   : > { %v374_v34 = vpop.permute.xlu0 %373 }
  0xb2   : > { %v376_v51 = vsel %vm375_vm6, %v372_v27, %v374_v34  ;;  %v380_v52 = vsel %vm375_vm6, %v374_v34, 0  ;;  %vm858_vm6 = vmpackc.low %vm287_vm1, %vm286_vm0  ;;  %v497_v27 = vld [vmem:[%s947_s2 + $0x8] sm:$0xff] }
  0xb3   : > { %v382_v60 = vsel %vm838_vm2, %v376_v51, 0  ;;  %v383_v61 = vsel %vm842_vm4, %v380_v52, 0  ;;  %v400_v3 = vsel %vm858_vm6, %v394_v58, 0  ;;  %v296_v9 = vsel %vm858_vm6, %v276_v0, 0  ;;  %507 = vperm.xlu1 %754, %v497_v27  }
  0xb4   : > { %v450_v6 = vrot.slane %v382_v60, 6  ;;  %v451_v7 = vrot.slane %v383_v61, 6  ;;  %v454_v13 = vrot.slane %v400_v3, 4  ;;  %v364_v24 = vsel %vm858_vm6, %v362_v15, 0 }
  0xb5   : > { %v462_v40 = vsel %vm459_vm10, %v296_v9, %v435_v8  ;;  %v443_v44 = vrot.slane %v364_v24, 2  ;;  %v440_v52 = vrot.slane %v347_v43, 4 }
  0xb6   : > { %v479_v25 = vsel %vm459_vm10, %v446_v2, %v450_v6  ;;  %v481_v26 = vsel %vm459_vm10, %v447_v10, %v451_v7  ;;  %v468_v48 = vsel %vm466_vm11, %v462_v40, %v439_v38 }
  0xb7   : > { %v483_v28 = vsel %vm466_vm11, %v479_v25, %v454_v13  ;;  %v485_v39 = vsel %vm466_vm11, %v481_v26, %v455_v14 }
  0xb9   : > { %v830_v37 = vpop.permute.xlu1 %409 }
  0xba   : > { %v408_v54 = vpop.permute.xlu0 %407  ;;  %v415_v12 = vsel %vm411_vm8, %v830_v37, 0 }
  0xbb   : > { %v412_v16 = vsel %vm411_vm8, %v408_v54, %v830_v37  ;;  %v458_v31 = vrot.slane %v415_v12, 2  ;;  %604 = vperm.xlu1 %754, %v596_v47   ;;  %v473_v54 = vsel %vm471_vm12, %v468_v48, %v443_v44 }
  0xbc   : > { %v457_v34 = vrot.slane %v412_v16, 2 }
  0xbd   : > { %v490_v46 = vsel %vm471_vm12, %v485_v39, %v458_v31 }
  0xbe   : > { %v487_v45 = vsel %vm471_vm12, %v483_v28, %v457_v34 }
  0xc1   : > { %v422_v55 = vpop.permute.xlu1 %421 }
  0xc2   : > { %v356_v19 = vpop.permute.xlu0 %355 }
  0xc3   : > { %v358_v37 = vsel %vm357_vm7, %v354_v5, %v356_v19 }
  0xc4   : > { %v365_v42 = vsel %vm846_vm5, %v358_v37, 0 }
  0xc5   : > { %v444_v50 = vrot.slane %v365_v42, 2 }
  0xc9   : > { %v424_v17 = vpop.permute.xlu1 %423 }
  0xca   : > { %v426_v21 = vsel %vm425_vm9, %v422_v55, %v424_v17  ;;  %v430_v23 = vsel %vm425_vm9, %v424_v17, 0  ;;  %v503_v3 = vpop.permute.xlu0 %502 }
  0xcb   : > { %v432_v32 = vsel %vm838_vm2, %v426_v21, 0  ;;  %v433_v33 = vsel %vm842_vm4, %v430_v23, 0 }
  0xcc   : > { %v538_v35 = vsel %vm459_vm10, %v432_v32, 0  ;;  %v541_v36 = vsel %vm459_vm10, %v433_v33, 0  ;;  %v727_v33 = vor.u32 %v736_v30, %v726_v29 }
  0xcd   : > { %548 = vmatpush.bf16.msra.mxu0 %v538_v35  ;;  %567 = vmatpush.bf16.msra.mxu1 %v541_v36 }
  0xd1   : > { %v269_v22 = vpop.permute.xlu1 %268  ;;  %549 = vmatpush.bf16.msra.mxu0 %v487_v45  ;;  %568 = vmatpush.bf16.msra.mxu1 %v490_v46 }
  0xd2   : > { %v271_v51 = vsel %vm270_vm15, %v820_v18, %v269_v22 }
  0xd3   : > { %v297_v53 = vsel %vm846_vm5, %v271_v51, 0 }
  0xd4   : > { %v465_v55 = vsel %vm459_vm10, %v297_v53, %v436_v49 }
  0xd5   : > { %550 = vmatpush.bf16.msra.mxu0 %v473_v54  ;;  %v470_v58 = vsel %vm466_vm11, %v465_v55, %v440_v52 }
  0xd6   : > { %v476_v18 = vsel %vm471_vm12, %v470_v58, %v444_v50 }
  0xd7   : > { %569 = vmatpush.bf16.msra.mxu1 %v476_v18 }
  0xd8   : > { %720 = vmatmul.msk.bf16.vlgmr.msra.gmra.mxu0 %vm530_vm13, %v734_v56 }
  0xd9   : > { %v513_v63 = vpop.permute.xlu1 %512 }
  0xda   : > { %722 = vmatmul.msk.bf16.vlgmr.msra.gmra.mxu1 %vm530_vm13, %v734_v56 }
  0xe8   : > { %721 = vmatmul.msk.bf16.gmra.mxu0 %vm530_vm13, %v735_v57 }
  0xea   : > { %723 = vmatmul.msk.bf16.gmra.mxu1 %vm530_vm13, %v735_v57 }
  0xfd   : > { %v518_v5 = vpop.permute.xlu2 %517 }
 0x105   : > { %v600_v35 = vpop.permute.xlu2 %599 }
 0x125   : > { %v508_v2 = vpop.permute.xlu1 %507 }
 0x12d   : > { %v605_v28 = vpop.permute.xlu1 %604 }
 0x155   : > { %v552_v59 = vpop.f32.mrf.mxu0 }
 0x156   : > { %v553_v10 = vadd.f32 %v552_v59, %v503_v3 }
 0x157   : > { %v571_v60 = vpop.f32.mrf.mxu1 }
 0x158   : > { %v572_v16 = vadd.f32 %v571_v60, %v503_v3  ;;  %v581_v25 = vmax.f32 %v553_v10, 0.0 }
 0x15a   : > { %v582_v31 = vmax.f32 %v572_v16, 0.0 }
 0x15d   : > { %v554_v61 = vpop.f32.mrf.mxu0 }
 0x15e   : > { %v555_v7 = vadd.f32 %v554_v61, %v508_v2 }
 0x15f   : > { %v573_v62 = vpop.f32.mrf.mxu1 }
 0x160   : > { %v574_v12 = vadd.f32 %v573_v62, %v508_v2  ;;  %v583_v17 = vmax.f32 %v555_v7, 0.0 }
 0x162   : > { %v584_v26 = vmax.f32 %v574_v12, 0.0  ;;  %v591_v32 = vpack.c.bf16 %v583_v17, %v581_v25 }
 0x164   : > { %v592_v34 = vpack.c.bf16 %v584_v26, %v582_v31 }
 0x165   : > { %v557_v0 = vpop.f32.mrf.mxu0 }
 0x166   : > { %v558_v4 = vadd.f32 %v557_v0, %v513_v63 }
 0x167   : > { %v576_v1 = vpop.f32.mrf.mxu1 }
 0x168   : > { %v577_v8 = vadd.f32 %v576_v1, %v513_v63  ;;  %v585_v13 = vmax.f32 %v558_v4, 0.0 }
 0x16a   : > { %v586_v19 = vmax.f32 %v577_v8, 0.0 }
 0x16d   : > { %v559_v6 = vpop.f32.mrf.mxu0 }
 0x16e   : > { %v560_v9 = vadd.f32 %v559_v6, %v518_v5 }
 0x16f   : > { %v578_v11 = vpop.f32.mrf.mxu1 }
 0x170   : > { %v587_v14 = vmax.f32 %v560_v9, 0.0  ;;  %v579_v15 = vadd.f32 %v578_v11, %v518_v5 }
 0x172   : > { %v588_v21 = vmax.f32 %v579_v15, 0.0  ;;  %v593_v23 = vpack.c.bf16 %v587_v14, %v585_v13 }
 0x174   : > { %622 = vmatpush.bf16.msra.mxu2 %v593_v23  ;;  %v594_v27 = vpack.c.bf16 %v588_v21, %v586_v19 }
 0x176   : > { %636 = vmatpush.bf16.msra.mxu3 %v594_v27 }
 0x178   : > { %623 = vmatpush.bf16.msra.mxu2 %v591_v32 }
 0x17a   : > { %637 = vmatpush.bf16.msra.mxu3 %v592_v34 }
 0x17b   : > { %728 = vmatmul.msk.bf16.vlgmr.msra.gmra.mxu2 %vm612_vm14, %v727_v33 }
 0x17d   : > { %729 = vmatmul.msk.bf16.vlgmr.msra.gmra.mxu3 %vm612_vm14, %v727_v33 }
 0x1fe   : > { %v625_v36 = vpop.f32.mrf.mxu2 }
 0x1ff   : > { %v626_v37 = vadd.f32 %v625_v36, %v600_v35 }
 0x200   : > { %v639_v38 = vpop.f32.mrf.mxu3 }
 0x201   : > { %644 = vst [vmem:[%s224_s7] sm:$0xff] %v626_v37  ;;  %v640_v24 = vadd.f32 %v639_v38, %v600_v35 }
 0x203   : > { %645 = vst [vmem:[%s224_s7 + $0x8] sm:$0xff] %v640_v24 }
 0x206   : > { %v627_v39 = vpop.f32.mrf.mxu2 }
 0x207   : > { %v628_v40 = vadd.f32 %v627_v39, %v605_v28 }
 0x208   : > { %v641_v41 = vpop.f32.mrf.mxu3 }
 0x209   : > { %646 = vst [vmem:[%s224_s7 + $0x10] sm:$0x3f] %v628_v40  ;;  %v642_v42 = vadd.f32 %v641_v41, %v605_v28 }
 0x20b   : > { %647 = vst [vmem:[%s224_s7 + $0x18] sm:$0x3f] %v642_v42 }
 0x20c PF: > { %s15_s18 = sadd.s32 1, %s763_s18  }
 0x20d   : > { %p12_p4 = scmp.ge.s32.totalorder %s15_s18, 4  }
 0x20f   :  { %14 = sbr.rel (!%p12_p4) target bundleno = 1 (0x1), region = 70 }

</bundles_post_ra>
